<compile_context>
chip_gen: v7x
topology: tpu7x:2x2x1
jax: 0.10.0
libtpu: 0.0.40
codegen_flags: <defaults>
</compile_context>

<pallas_src>
import functools

import jax
import jax.numpy as jnp
from jax.experimental import pallas as pl
from jax.experimental.pallas import tpu as pltpu


_BIG = 1e10   # penalty for masked-out (invalid) coarse points
_PEN = 1e6    # penalty for valid points outside the query radius
_VMEM_LIMIT = 48 * 1024 * 1024   # explicit budget: fits v7x's 64 MiB VMEM with headroom


def _pick_tile(n, target=512):
    """Largest lane-legal tile of the fine-point axis: multiple of 128 dividing n, or n."""
    if n <= target:
        return n
    t = (target // 128) * 128
    while t >= 128:
        if n % t == 0:
            return t
        t -= 128
    return n


# ----------------------------------------------------------------------------
# Kernels
# ----------------------------------------------------------------------------
def _stage_compute(up_xyz_t, dn_xyz, dn_mask, dn_feat_t, skip_t,
                   w_up, w_skip, bias, radius):
    """Upsample(nearest-valid-in-radius) + concat skip + folded Conv1x1/BN + ReLU.

    up_xyz_t : (8, T)     rows 0..2 = x,y,z of the fine points (lane-dense)
    dn_xyz   : (Ndn, 3)   coarse xyz (resident per batch)
    dn_mask  : (Ndn, 1)   1.0 = valid coarse point
    dn_feat_t: (Cd, Ndn)  coarse features (channels x points)
    skip_t   : (Cs, T)    fine skip features
    w_up     : (Co, Cd) bf16, w_skip: (Co, Cs) bf16, bias: (Co, 1) f32
    returns  : (Co, T) f32
    """
    ndn = dn_xyz.shape[0]
    t = up_xyz_t.shape[1]

    # squared pairwise distances in (Ndn, T) layout (fine points on lanes); exact f32 VPU
    d2 = jnp.zeros((ndn, t), jnp.float32)
    for k in range(3):
        diff = dn_xyz[:, k:k + 1] - up_xyz_t[k:k + 1, :]
        d2 = d2 + diff * diff

    # single fused penalty pass: invalid coarse point -> +_BIG, out-of-radius -> +_PEN
    invalid_pen = (1.0 - dn_mask) * jnp.float32(_BIG)                    # (Ndn, 1)
    d2 = d2 + jnp.where(d2 > jnp.float32(radius * radius),
                        invalid_pen + jnp.float32(_PEN), invalid_pen)

    # first-argmin along the coarse (sublane) axis, expressed as min + iota
    row = jax.lax.broadcasted_iota(jnp.int32, (ndn, t), 0)
    min_d = jnp.min(d2, axis=0, keepdims=True)                           # (1, T)
    idx = jnp.min(jnp.where(d2 <= min_d, row, ndn), axis=0, keepdims=True)
    onehot = (row == idx).astype(jnp.bfloat16)                           # (Ndn, T), exact 0/1

    # gather nearest coarse features via one-hot matmul (MXU, bf16 in / f32 acc)
    gathered = jnp.dot(dn_feat_t.astype(jnp.bfloat16), onehot,
                       preferred_element_type=jnp.float32)               # (Cd, T)

    # fused concat + Conv1x1 (BN folded) + ReLU; both contractions accumulate into acc
    acc = jnp.dot(w_up, gathered.astype(jnp.bfloat16),
                  preferred_element_type=jnp.float32)                    # (Co, T)
    acc += jnp.dot(w_skip, skip_t.astype(jnp.bfloat16),
                   preferred_element_type=jnp.float32)
    acc += bias
    return jnp.maximum(acc, 0.0)


def _stage_kernel(up_xyz_ref, dn_xyz_ref, dn_mask_ref, dn_feat_ref, skip_ref,
                  w_up_ref, w_skip_ref, b_ref, out_ref, *, radius):
    feat = _stage_compute(up_xyz_ref[...], dn_xyz_ref[...], dn_mask_ref[...],
                          dn_feat_ref[...], skip_ref[...],
                          w_up_ref[...], w_skip_ref[...], b_ref[...], radius)
    out_ref[...] = feat.astype(out_ref.dtype)


def _stage_head_kernel(up_xyz_ref, dn_xyz_ref, dn_mask_ref, dn_feat_ref, skip_ref,
                       w_up_ref, w_skip_ref, b_ref,
                       w1_ref, b1_ref, w2_ref, b2_ref, out_ref, *, radius):
    feat = _stage_compute(up_xyz_ref[...], dn_xyz_ref[...], dn_mask_ref[...],
                          dn_feat_ref[...], skip_ref[...],
                          w_up_ref[...], w_skip_ref[...], b_ref[...], radius)
    # head: Conv1x1(noBias)+BN+ReLU (folded) -> Conv1x1(+bias), still (C, N) lane-dense
    h = jnp.dot(w1_ref[...], feat.astype(jnp.bfloat16),
                preferred_element_type=jnp.float32) + b1_ref[...]
    h = jnp.maximum(h, 0.0)
    out_ref[...] = (jnp.dot(w2_ref[...], h.astype(jnp.bfloat16),
                            preferred_element_type=jnp.float32)
                    + b2_ref[...]).astype(out_ref.dtype)


# ----------------------------------------------------------------------------
# Wrapper
# ----------------------------------------------------------------------------
def upsample_conv_stage(up_xyz, dn_xyz, dn_mask, dn_feat, skip_feat,
                        w_up, w_skip, bias, *, radius, head_params=None):
    """One decoder stage; if head_params is given the classification head is fused in."""
    B, nup, _ = up_xyz.shape
    ndn = dn_xyz.shape[1]
    cd = dn_feat.shape[1]
    cs = skip_feat.shape[1]
    co = w_up.shape[0]

    tile = _pick_tile(nup)
    n_tiles = nup // tile

    # wrapper-side layout plumbing (cheap, amortized across all Nup tiles / grid steps)
    up_xyz_t = jnp.pad(jnp.transpose(up_xyz, (0, 2, 1)),
                       ((0, 0), (0, 5), (0, 0)))                 # (B, 8, Nup) lane-dense
    dn_mask_c = jnp.reshape(dn_mask, (B, ndn, 1))                # (B, Ndn, 1) column
    w_up_b = w_up.astype(jnp.bfloat16)
    w_skip_b = w_skip.astype(jnp.bfloat16)

    sq = pl.Squeezed()
    in_specs = [
        pl.BlockSpec((sq, 8, tile), lambda b, t: (b, 0, t)),     # fine xyz tile
        pl.BlockSpec((sq, ndn, 3), lambda b, t: (b, 0, 0)),      # coarse xyz (resident)
        pl.BlockSpec((sq, ndn, 1), lambda b, t: (b, 0, 0)),      # coarse mask (resident)
        pl.BlockSpec((sq, cd, ndn), lambda b, t: (b, 0, 0)),     # coarse features (resident)
        pl.BlockSpec((sq, cs, tile), lambda b, t: (b, 0, t)),    # skip features tile
        pl.BlockSpec((co, cd), lambda b, t: (0, 0)),             # folded conv weights/bias
        pl.BlockSpec((co, cs), lambda b, t: (0, 0)),
        pl.BlockSpec((co, 1), lambda b, t: (0, 0)),
    ]
    args = [up_xyz_t, dn_xyz, dn_mask_c, dn_feat, skip_feat, w_up_b, w_skip_b, bias]

    if head_params is None:
        kernel = functools.partial(_stage_kernel, radius=float(radius))
        out_c = co
        out_dtype = jnp.bfloat16      # inter-stage features: halve HBM traffic
    else:
        w1, b1, w2, b2 = head_params
        ch = w1.shape[0]
        out_c = w2.shape[0]
        out_dtype = jnp.float32
        kernel = functools.partial(_stage_head_kernel, radius=float(radius))
        in_specs += [
            pl.BlockSpec((ch, co), lambda b, t: (0, 0)),
            pl.BlockSpec((ch, 1), lambda b, t: (0, 0)),
            pl.BlockSpec((out_c, ch), lambda b, t: (0, 0)),
            pl.BlockSpec((out_c, 1), lambda b, t: (0, 0)),
        ]
        args += [w1.astype(jnp.bfloat16), b1, w2.astype(jnp.bfloat16), b2]

    return pl.pallas_call(
        kernel,
        out_shape=jax.ShapeDtypeStruct((B, out_c, nup), out_dtype),
        grid_spec=pltpu.PrefetchScalarGridSpec(
            num_scalar_prefetch=0,
            grid=(B, n_tiles),
            in_specs=in_specs,
            out_specs=pl.BlockSpec((sq, out_c, tile), lambda b, t: (b, 0, t)),
        ),
        compiler_params=pltpu.CompilerParams(
            dimension_semantics=("parallel", "parallel"),
            vmem_limit_bytes=_VMEM_LIMIT),
    )(*args)


def multi_dim_head_forward(end_points, stage_params, head_params, radii, stage_io):
    """Pallas implementation of MultiDimHeadResNet.forward.  Returns (B, num_classes, N1)."""
    feats = end_points['res5_features']                       # (B, C5, N5)
    last = len(stage_io) - 1
    for s, ((up_l, dn_l), radius, (w_up, w_skip, bias)) in enumerate(
            zip(stage_io, radii, stage_params)):
        feats = upsample_conv_stage(
            end_points[f'{up_l}_xyz'], end_points[f'{dn_l}_xyz'],
            end_points[f'{dn_l}_mask'], feats, end_points[f'{up_l}_features'],
            w_up, w_skip, bias, radius=radius,
            head_params=head_params if s == last else None)
    return feats                                              # already (B, num_classes, N1)


# ----------------------------------------------------------------------------
# Pure-JAX reference (mirrors the kernel's bf16-operand / f32-accumulate numerics)
# ----------------------------------------------------------------------------
def reference_forward(end_points, stage_params, head_params, radii, stage_io):
    cast = lambda x: x.astype(jnp.bfloat16).astype(jnp.float32)

    def upsample(up_xyz, dn_xyz, dn_mask, dn_feat, radius):
        diff = up_xyz[:, :, None, :] - dn_xyz[:, None, :, :]
        d2 = jnp.sum(diff * diff, axis=-1)                        # (B, Nup, Ndn)
        invalid = (1.0 - dn_mask) * _BIG                          # (B, 1, Ndn)
        d2 = d2 + jnp.where(d2 > radius * radius, invalid + _PEN, invalid)
        idx = jnp.argmin(d2, axis=-1)                             # (B, Nup)
        idxb = jnp.broadcast_to(idx[:, None, :],
                                (dn_feat.shape[0], dn_feat.shape[1], idx.shape[1]))
        return jnp.take_along_axis(dn_feat, idxb, axis=2)         # (B, Cd, Nup)

    feats = end_points['res5_features']
    for (up_l, dn_l), radius, (w_up, w_skip, bias) in zip(stage_io, radii, stage_params):
        up_f = upsample(end_points[f'{up_l}_xyz'], end_points[f'{dn_l}_xyz'],
                        end_points[f'{dn_l}_mask'], cast(feats), radius)
        acc = jnp.einsum('oc,bcn->bon', cast(w_up), up_f, precision='highest')
        acc += jnp.einsum('oc,bcn->bon', cast(w_skip),
                          cast(end_points[f'{up_l}_features']), precision='highest')
        feats = jnp.maximum(acc + bias[None], 0.0)
    w1, b1, w2, b2 = head_params
    h = jnp.maximum(jnp.einsum('oc,bcn->bon', cast(w1), cast(feats),
                               precision='highest') + b1[None], 0.0)
    return jnp.einsum('oc,bcn->bon', cast(w2), cast(h), precision='highest') + b2[None]


# ----------------------------------------------------------------------------
# Deterministic parameter / input construction + demo
# ----------------------------------------------------------------------------
def fold_conv_bn(key, cin, cout, eps=1e-5):
    """Conv1d(cin->cout, k=1, bias=False) + BatchNorm1d(cout) folded (eval mode)."""
    k1, k2, k3, k4, k5 = jax.random.split(key, 5)
    w = 0.1 * jax.random.normal(k1, (cout, cin), jnp.float32)
    gamma = 1.0 + 0.1 * jax.random.normal(k2, (cout,), jnp.float32)
    beta = 0.1 * jax.random.normal(k3, (cout,), jnp.float32)
    mean = 0.1 * jax.random.normal(k4, (cout,), jnp.float32)
    var = 1.0 + 0.1 * jnp.abs(jax.random.normal(k5, (cout,), jnp.float32))
    scale = gamma / jnp.sqrt(var + eps)
    w_folded = w * scale[:, None]                      # (cout, cin), applied as W @ x
    b_folded = (beta - scale * mean).reshape(cout, 1)  # (cout, 1)
    return w_folded.astype(jnp.float32), b_folded.astype(jnp.float32)


if __name__ == "__main__":
    B = 2
    width = 8
    num_classes = 3
    base_radius = 0.1
    nsamples = [16, 16, 16, 16]   # unused in 'nearest' mode (see TODO at top)

    # point counts / channel counts per resolution level of the ResNet backbone
    N = {1: 64, 2: 32, 3: 16, 4: 8, 5: 8}
    C = {1: width, 2: 2 * width, 3: 4 * width, 4: 8 * width, 5: 16 * width}

    key = jax.random.PRNGKey(0)
    keys = iter(jax.random.split(key, 64))

    end_points = {}
    for lvl in range(1, 6):
        end_points[f'res{lvl}_xyz'] = jax.random.uniform(
            next(keys), (B, N[lvl], 3), jnp.float32)
        mask = jnp.ones((B, 1, N[lvl]), jnp.float32)
        if lvl == 5:
            mask = mask.at[:, :, -2:].set(0.0)        # exercise the mask path
        end_points[f'res{lvl}_mask'] = mask
        end_points[f'res{lvl}_features'] = jax.random.normal(
            next(keys), (B, C[lvl], N[lvl]), jnp.float32)   # PyTorch NCW layout

    # decoder stages: (fine level, coarse level), channel split of the folded conv weight
    stage_io = [("res4", "res5"), ("res3", "res4"), ("res2", "res3"), ("res1", "res2")]
    radii = [8 * base_radius, 4 * base_radius, 2 * base_radius, base_radius]
    # (c_upsampled, c_skip, c_out) for up_conv0..up_conv3
    stage_dims = [
        (C[5], C[4], 4 * width),
        (4 * width, C[3], 2 * width),
        (2 * width, C[2], width),
        (width, C[1], width // 2),
    ]
    stage_params = []
    for (c_up, c_skip, c_out) in stage_dims:
        w_f, b_f = fold_conv_bn(next(keys), c_up + c_skip, c_out)
        stage_params.append((w_f[:, :c_up], w_f[:, c_up:], b_f))

    # head: Conv1x1(noBias)+BN+ReLU folded, then Conv1x1 with bias
    w1, b1 = fold_conv_bn(next(keys), width // 2, width // 2)
    w2 = 0.1 * jax.random.normal(next(keys), (num_classes, width // 2), jnp.float32)
    b2 = 0.1 * jax.random.normal(next(keys), (num_classes, 1), jnp.float32)
    head_params = (w1, b1, w2, b2)

    logits = multi_dim_head_forward(end_points, stage_params, head_params, radii, stage_io)
    logits = jax.block_until_ready(logits)

    expected = reference_forward(end_points, stage_params, head_params, radii, stage_io)
    expected = jax.block_until_ready(expected)

    assert logits.shape == (B, num_classes, N[1]), logits.shape
    max_err = float(jnp.max(jnp.abs(logits - expected)))
    if not bool(jnp.allclose(logits, expected, atol=2e-2, rtol=2e-2)):
        raise AssertionError(f"Pallas output mismatch vs reference, max abs err = {max_err}")

    print("KERNEL_OK")
</pallas_src>

<mosaic_0001>
module attributes {stable_mosaic.version = 11 : i64} {
  func.func @_stage_kernel(%arg0: i32, %arg1: i32, %arg2: memref<1x8x8xf32, #tpu.memory_space<vmem>>, %arg3: memref<1x8x3xf32, #tpu.memory_space<vmem>>, %arg4: memref<1x8x1xf32, #tpu.memory_space<vmem>>, %arg5: memref<1x128x8xf32, #tpu.memory_space<vmem>>, %arg6: memref<1x64x8xf32, #tpu.memory_space<vmem>>, %arg7: memref<32x128xbf16, #tpu.memory_space<vmem>>, %arg8: memref<32x64xbf16, #tpu.memory_space<vmem>>, %arg9: memref<32x1xf32, #tpu.memory_space<vmem>>, %arg10: memref<1x32x8xbf16, #tpu.memory_space<vmem>>) attributes {dimension_semantics = [#tpu.dimension_semantics<parallel>, #tpu.dimension_semantics<parallel>], iteration_bounds = array<i64: 2, 1>, scalar_prefetch = 0 : i64, scratch_operands = 0 : i64, tpu.core_type = #tpu.core_type<tc>, window_params = [{transform_indices = @transform_0, window_bounds = array<i64: 1, 8, 8>}, {transform_indices = @transform_1, window_bounds = array<i64: 1, 8, 3>}, {transform_indices = @transform_2, window_bounds = array<i64: 1, 8, 1>}, {transform_indices = @transform_3, window_bounds = array<i64: 1, 128, 8>}, {transform_indices = @transform_4, window_bounds = array<i64: 1, 64, 8>}, {pipeline_mode = #tpu.pipeline_mode<synchronous>, transform_indices = @transform_5, window_bounds = array<i64: 32, 128>}, {pipeline_mode = #tpu.pipeline_mode<synchronous>, transform_indices = @transform_6, window_bounds = array<i64: 32, 64>}, {pipeline_mode = #tpu.pipeline_mode<synchronous>, transform_indices = @transform_7, window_bounds = array<i64: 32, 1>}, {transform_indices = @transform_8, window_bounds = array<i64: 1, 32, 8>}]} {
    %c0 = arith.constant 0 : index
    %c0_0 = arith.constant 0 : index
    %c0_1 = arith.constant 0 : index
    %0 = vector.load %arg2[%c0, %c0_0, %c0_1] : memref<1x8x8xf32, #tpu.memory_space<vmem>>, vector<1x8x8xf32>
    %1 = vector.shape_cast %0 : vector<1x8x8xf32> to vector<8x8xf32>
    %c0_2 = arith.constant 0 : index
    %c0_3 = arith.constant 0 : index
    %c0_4 = arith.constant 0 : index
    %2 = vector.load %arg3[%c0_2, %c0_3, %c0_4] : memref<1x8x3xf32, #tpu.memory_space<vmem>>, vector<1x8x3xf32>
    %3 = vector.shape_cast %2 : vector<1x8x3xf32> to vector<8x3xf32>
    %c0_5 = arith.constant 0 : index
    %c0_6 = arith.constant 0 : index
    %c0_7 = arith.constant 0 : index
    %4 = vector.load %arg4[%c0_5, %c0_6, %c0_7] : memref<1x8x1xf32, #tpu.memory_space<vmem>>, vector<1x8x1xf32>
    %5 = vector.shape_cast %4 : vector<1x8x1xf32> to vector<8x1xf32>
    %c0_8 = arith.constant 0 : index
    %c0_9 = arith.constant 0 : index
    %c0_10 = arith.constant 0 : index
    %6 = vector.load %arg5[%c0_8, %c0_9, %c0_10] : memref<1x128x8xf32, #tpu.memory_space<vmem>>, vector<1x128x8xf32>
    %7 = vector.shape_cast %6 : vector<1x128x8xf32> to vector<128x8xf32>
    %c0_11 = arith.constant 0 : index
    %c0_12 = arith.constant 0 : index
    %c0_13 = arith.constant 0 : index
    %8 = vector.load %arg6[%c0_11, %c0_12, %c0_13] : memref<1x64x8xf32, #tpu.memory_space<vmem>>, vector<1x64x8xf32>
    %9 = vector.shape_cast %8 : vector<1x64x8xf32> to vector<64x8xf32>
    %c0_14 = arith.constant 0 : index
    %c0_15 = arith.constant 0 : index
    %10 = vector.load %arg7[%c0_14, %c0_15] : memref<32x128xbf16, #tpu.memory_space<vmem>>, vector<32x128xbf16>
    %c0_16 = arith.constant 0 : index
    %c0_17 = arith.constant 0 : index
    %11 = vector.load %arg8[%c0_16, %c0_17] : memref<32x64xbf16, #tpu.memory_space<vmem>>, vector<32x64xbf16>
    %c0_18 = arith.constant 0 : index
    %c0_19 = arith.constant 0 : index
    %12 = vector.load %arg9[%c0_18, %c0_19] : memref<32x1xf32, #tpu.memory_space<vmem>>, vector<32x1xf32>
    %cst = arith.constant 0.000000e+00 : f32
    %13 = vector.broadcast %cst : f32 to vector<8x8xf32>
    %14 = vector.extract_strided_slice %3 {offsets = [0, 0], sizes = [8, 1], strides = [1, 1]} : vector<8x3xf32> to vector<8x1xf32>
    %15 = vector.extract_strided_slice %1 {offsets = [0, 0], sizes = [1, 8], strides = [1, 1]} : vector<8x8xf32> to vector<1x8xf32>
    %16 = vector.broadcast %14 : vector<8x1xf32> to vector<8x8xf32>
    %17 = vector.broadcast %15 : vector<1x8xf32> to vector<8x8xf32>
    %18 = arith.subf %16, %17 : vector<8x8xf32>
    %19 = arith.mulf %18, %18 : vector<8x8xf32>
    %20 = arith.addf %13, %19 : vector<8x8xf32>
    %21 = vector.extract_strided_slice %3 {offsets = [0, 1], sizes = [8, 1], strides = [1, 1]} : vector<8x3xf32> to vector<8x1xf32>
    %22 = vector.extract_strided_slice %1 {offsets = [1, 0], sizes = [1, 8], strides = [1, 1]} : vector<8x8xf32> to vector<1x8xf32>
    %23 = vector.broadcast %21 : vector<8x1xf32> to vector<8x8xf32>
    %24 = vector.broadcast %22 : vector<1x8xf32> to vector<8x8xf32>
    %25 = arith.subf %23, %24 : vector<8x8xf32>
    %26 = arith.mulf %25, %25 : vector<8x8xf32>
    %27 = arith.addf %20, %26 : vector<8x8xf32>
    %28 = vector.extract_strided_slice %3 {offsets = [0, 2], sizes = [8, 1], strides = [1, 1]} : vector<8x3xf32> to vector<8x1xf32>
    %29 = vector.extract_strided_slice %1 {offsets = [2, 0], sizes = [1, 8], strides = [1, 1]} : vector<8x8xf32> to vector<1x8xf32>
    %30 = vector.broadcast %28 : vector<8x1xf32> to vector<8x8xf32>
    %31 = vector.broadcast %29 : vector<1x8xf32> to vector<8x8xf32>
    %32 = arith.subf %30, %31 : vector<8x8xf32>
    %33 = arith.mulf %32, %32 : vector<8x8xf32>
    %34 = arith.addf %27, %33 : vector<8x8xf32>
    %cst_20 = arith.constant 1.000000e+00 : f32
    %35 = vector.broadcast %cst_20 : f32 to vector<8x1xf32>
    %36 = arith.subf %35, %5 : vector<8x1xf32>
    %cst_21 = arith.constant 1.000000e+10 : f32
    %37 = vector.broadcast %cst_21 : f32 to vector<8x1xf32>
    %38 = arith.mulf %36, %37 : vector<8x1xf32>
    %cst_22 = arith.constant 6.400000e-01 : f32
    %39 = vector.broadcast %cst_22 : f32 to vector<8x8xf32>
    %40 = arith.cmpf ogt, %34, %39 : vector<8x8xf32>
    %cst_23 = arith.constant 1.000000e+06 : f32
    %41 = vector.broadcast %cst_23 : f32 to vector<8x1xf32>
    %42 = arith.addf %38, %41 : vector<8x1xf32>
    %43 = vector.shape_cast %42 : vector<8x1xf32> to vector<8x1xf32>
    %44 = vector.broadcast %43 : vector<8x1xf32> to vector<8x8xf32>
    %45 = vector.shape_cast %38 : vector<8x1xf32> to vector<8x1xf32>
    %46 = vector.broadcast %45 : vector<8x1xf32> to vector<8x8xf32>
    %47 = arith.select %40, %44, %46 : vector<8x8xi1>, vector<8x8xf32>
    %48 = arith.addf %34, %47 : vector<8x8xf32>
    %49 = tpu.iota {dimensions = array<i32: 0>} : vector<8x8xi32>
    %cst_24 = arith.constant dense<0x7F800000> : vector<8xf32>
    %50 = vector.multi_reduction <minimumf>, %48, %cst_24 [0] : vector<8x8xf32> to vector<8xf32>
    %51 = vector.shape_cast %50 : vector<8xf32> to vector<1x8xf32>
    %52 = vector.broadcast %51 : vector<1x8xf32> to vector<8x8xf32>
    %53 = arith.cmpf ole, %48, %52 : vector<8x8xf32>
    %c8_i32 = arith.constant 8 : i32
    %54 = vector.broadcast %c8_i32 : i32 to vector<8x8xi32>
    %55 = arith.select %53, %49, %54 : vector<8x8xi1>, vector<8x8xi32>
    %cst_25 = arith.constant dense<2147483647> : vector<8xi32>
    %56 = vector.multi_reduction <minsi>, %55, %cst_25 [0] : vector<8x8xi32> to vector<8xi32>
    %57 = vector.shape_cast %56 : vector<8xi32> to vector<1x8xi32>
    %58 = vector.broadcast %57 : vector<1x8xi32> to vector<8x8xi32>
    %59 = arith.cmpi eq, %49, %58 : vector<8x8xi32>
    %60 = arith.extui %59 : vector<8x8xi1> to vector<8x8xi32>
    %61 = arith.sitofp %60 : vector<8x8xi32> to vector<8x8xf32>
    %62 = arith.truncf %61 : vector<8x8xf32> to vector<8x8xbf16>
    %63 = arith.truncf %7 : vector<128x8xf32> to vector<128x8xbf16>
    %cst_26 = arith.constant dense<0.000000e+00> : vector<128x8xf32>
    %64 = tpu.matmul %63, %62, %cst_26 {dimension_numbers = #tpu.dot_dimension_numbers<[1], [0], [0], [1], [0, 0, 1, 1], [], []>} : vector<128x8xbf16>, vector<8x8xbf16>, vector<128x8xf32> -> vector<128x8xf32>
    %65 = arith.truncf %64 : vector<128x8xf32> to vector<128x8xbf16>
    %cst_27 = arith.constant dense<0.000000e+00> : vector<32x8xf32>
    %66 = tpu.matmul %10, %65, %cst_27 {dimension_numbers = #tpu.dot_dimension_numbers<[1], [0], [0], [1], [0, 0, 1, 1], [], []>} : vector<32x128xbf16>, vector<128x8xbf16>, vector<32x8xf32> -> vector<32x8xf32>
    %67 = arith.truncf %9 : vector<64x8xf32> to vector<64x8xbf16>
    %cst_28 = arith.constant dense<0.000000e+00> : vector<32x8xf32>
    %68 = tpu.matmul %11, %67, %cst_28 {dimension_numbers = #tpu.dot_dimension_numbers<[1], [0], [0], [1], [0, 0, 1, 1], [], []>} : vector<32x64xbf16>, vector<64x8xbf16>, vector<32x8xf32> -> vector<32x8xf32>
    %69 = arith.addf %66, %68 : vector<32x8xf32>
    %70 = vector.broadcast %12 : vector<32x1xf32> to vector<32x8xf32>
    %71 = arith.addf %69, %70 : vector<32x8xf32>
    %cst_29 = arith.constant 0.000000e+00 : f32
    %72 = vector.broadcast %cst_29 : f32 to vector<32x8xf32>
    %73 = arith.maximumf %71, %72 : vector<32x8xf32>
    %74 = arith.truncf %73 : vector<32x8xf32> to vector<32x8xbf16>
    %c0_30 = arith.constant 0 : index
    %c0_31 = arith.constant 0 : index
    %c0_32 = arith.constant 0 : index
    %75 = vector.load %arg10[%c0_30, %c0_31, %c0_32] : memref<1x32x8xbf16, #tpu.memory_space<vmem>>, vector<1x32x8xbf16>
    %76 = vector.shape_cast %75 : vector<1x32x8xbf16> to vector<32x8xbf16>
    %77 = vector.shape_cast %74 : vector<32x8xbf16> to vector<1x32x8xbf16>
    tpu.vector_store %arg10[%c0_30, %c0_31, %c0_32], %77 {strides = array<i32>} : memref<1x32x8xbf16, #tpu.memory_space<vmem>>, vector<1x32x8xbf16>,
    return
  }
  func.func @transform_0(%arg0: i32, %arg1: i32) -> (i32, i32, i32) {
    %c0_i32 = arith.constant 0 : i32
    %c0_i32_0 = arith.constant 0 : i32
    return %arg0, %c0_i32, %arg1 : i32, i32, i32
  }
  func.func @transform_1(%arg0: i32, %arg1: i32) -> (i32, i32, i32) {
    %c0_i32 = arith.constant 0 : i32
    %c0_i32_0 = arith.constant 0 : i32
    %c0_i32_1 = arith.constant 0 : i32
    return %arg0, %c0_i32, %c0_i32_0 : i32, i32, i32
  }
  func.func @transform_2(%arg0: i32, %arg1: i32) -> (i32, i32, i32) {
    %c0_i32 = arith.constant 0 : i32
    %c0_i32_0 = arith.constant 0 : i32
    %c0_i32_1 = arith.constant 0 : i32
    return %arg0, %c0_i32, %c0_i32_0 : i32, i32, i32
  }
  func.func @transform_3(%arg0: i32, %arg1: i32) -> (i32, i32, i32) {
    %c0_i32 = arith.constant 0 : i32
    %c0_i32_0 = arith.constant 0 : i32
    %c0_i32_1 = arith.constant 0 : i32
    return %arg0, %c0_i32, %c0_i32_0 : i32, i32, i32
  }
  func.func @transform_4(%arg0: i32, %arg1: i32) -> (i32, i32, i32) {
    %c0_i32 = arith.constant 0 : i32
    %c0_i32_0 = arith.constant 0 : i32
    return %arg0, %c0_i32, %arg1 : i32, i32, i32
  }
  func.func @transform_5(%arg0: i32, %arg1: i32) -> (i32, i32) {
    %c0_i32 = arith.constant 0 : i32
    %c0_i32_0 = arith.constant 0 : i32
    %c0_i32_1 = arith.constant 0 : i32
    return %c0_i32, %c0_i32_0 : i32, i32
  }
  func.func @transform_6(%arg0: i32, %arg1: i32) -> (i32, i32) {
    %c0_i32 = arith.constant 0 : i32
    %c0_i32_0 = arith.constant 0 : i32
    %c0_i32_1 = arith.constant 0 : i32
    return %c0_i32, %c0_i32_0 : i32, i32
  }
  func.func @transform_7(%arg0: i32, %arg1: i32) -> (i32, i32) {
    %c0_i32 = arith.constant 0 : i32
    %c0_i32_0 = arith.constant 0 : i32
    %c0_i32_1 = arith.constant 0 : i32
    return %c0_i32, %c0_i32_0 : i32, i32
  }
  func.func @transform_8(%arg0: i32, %arg1: i32) -> (i32, i32, i32) {
    %c0_i32 = arith.constant 0 : i32
    %c0_i32_0 = arith.constant 0 : i32
    return %arg0, %c0_i32, %arg1 : i32, i32, i32
  }
}

</mosaic_0001>

<bundles_post_ra>
// kernel: tpu_custom_call.1
= control target key start
LH: loop header
LB: loop body
LE: loop exit
PB: predicated region body
PF: predicated region fallthrough
CT: control target
= control target key end

     0   :  { %s1222_s27 = smov 0   ;;  %s1224_s28 = smov 0   ;;  %s1330_s0 = inlined_call_operand.vmem [shape: f32[2,8,8], index: 0, kind: input, shape index: {}]   ;;  %s1331_s1 = inlined_call_operand.vmem [shape: f32[2,8,3], index: 1, kind: input, shape index: {}]   ;;  %s1332_s2 = inlined_call_operand.vmem [shape: f32[2,8,1], index: 2, kind: input, shape index: {}]   ;;  %s1333_s3 = inlined_call_operand.vmem [shape: f32[2,128,8], index: 3, kind: input, shape index: {}]   ;;  %s1334_s4 = inlined_call_operand.vmem [shape: f32[2,64,8], index: 4, kind: input, shape index: {}]   ;;  %s1335_s5 = inlined_call_operand.vmem [shape: bf16[32,128], index: 5, kind: input, shape index: {}]   ;;  %s1336_s6 = inlined_call_operand.vmem [shape: bf16[32,64], index: 6, kind: input, shape index: {}]   ;;  %s1337_s7 = inlined_call_operand.vmem [shape: f32[32,1], index: 7, kind: input, shape index: {}]   ;;  %s1338_s8 = inlined_call_operand.vmem [shape: bf16[2,32,8], index: 8, kind: output, shape index: {}]  }
   0x1   :  { %s1226_s29 = smov 0  }
   0x2 LB: > { %s30_s30 = sadd.s32 1, %s1167_s28  ;;  %p994_p0 = scmp.ge.s32.totalorder %s1171_s29, 1  ;;  %s1171_s29 = sphi %s1226_s29, %s18_s29   ;;  %s1167_s28 = sphi %s1224_s28, %s1340_s28   ;;  %s1163_s27 = sphi %s1222_s27, %s1339_s27  }
   0x3   : > { %p32_p1 = scmp.ge.s32.totalorder %s30_s30, 2  ;;  %p323_p2 = scmp.lt.s32.totalorder %s1171_s29, 3 }
   0x5   : > { %s1342_s30 = smov (%p32_p1, %s30_s30), 0  ;;  %p324_p3 = pnand %p994_p0, %p323_p2 }
   0x6   : > { %p383_p4 = scmp.lt.s32.totalorder (!%p324_p3), %s1163_s27, 1  ;;  %v1173_v0 = vmov (!%p324_p3), 0   ;;  %v1174_v1 = vmov (!%p324_p3), 2   ;;  %v1175_v6 = vmov (!%p324_p3), 1   ;;  %v456_v8 = vld [vmem:[%s1337_s7 + $0x8] sm:$0xff] (!%p324_p3)  ;;  %v457_v9 = vld [vmem:[%s1337_s7 + $0x10] sm:$0xff] (!%p324_p3)  ;;  %v464_v13 = vlaneseq (!%p324_p3) }
   0x7   : > { %327 = sbr.rel (%p324_p3) target bundleno = 672 (0x2a0), region = 52  ;;  %1140 = vset.pattern.permute.xlu0 (!%p324_p3), %v1173_v0  ;;  %1142 = vset.pattern.permute.xlu1 (!%p324_p3), %v1174_v1  ;;  %vm511_vm0 = vcmask (!%p324_p3), 64512   ;;  %v1176_v52 = vmov (!%p324_p3), 0.0   ;;  %vm567_vm7 = vcmask (!%p324_p3), 1043456   ;;  %vm690_vm8 = vcmask (!%p324_p3), 523264  }
   0x8   : > { %v465_v14 = vshrl.u32 (!%p324_p3), %v464_v13, 7  ;;  %vm851_vm9 = vcmask (!%p324_p3), 60416  }
   0xa   : > { %v466_v15 = vsub.s32 (!%p324_p3), 0, %v465_v14  ;;  %v488_v17 = vsub.s32 (!%p324_p3), 2, %v465_v14  ;;  %v477_v18 = vsub.s32 (!%p324_p3), 1, %v465_v14 }
   0xe   : > { %s1344_s27 = smov (!%p383_p4, %s1163_s27), 1 }
   0xf   : > { %s1243_s9 = sshll.u32 %s1344_s27, 3  ;;  %s1025_s20 = sshll.u32 %s1344_s27, 7 }
  0x10   : > { %s393_s12 = scalar_lea.vmem %s1331_s1, %s1243_s9  ;;  %s397_s15 = scalar_lea.vmem %s1332_s2, %s1243_s9 }
  0x11   : > { %v421_v2 = vld [vmem:[%s393_s12] sm:$0xff]  ;;  %s1263_s23 = scalar_lea.vmem %s1333_s3, %s1025_s20  ;;  %s389_s26 = scalar_lea.vmem %s1330_s0, %s1243_s9 }
  0x12   : > { %v422_v3 = vld [vmem:[%s397_s15] sm:$0xff]  ;;  %461 = vperm.xlu0 %1140, %v421_v2   ;;  %483 = vperm.xlu1 %1142, %v421_v2   ;;  %v424_v11 = vld [vmem:[%s1263_s23 + $0x8] sm:$0xff]  ;;  %v425_v54 = vld [vmem:[%s1263_s23 + $0x10] sm:$0xff]  ;;  %s1026_s9 = sshll.u32 %s1344_s27, 6  ;;  %s1027_s25 = sshll.u32 %s1344_s27, 4 }
  0x13   : > { %v493_v4 = vsub.f32 1.0, %v422_v3  ;;  %v423_v10 = vld [vmem:[%s1263_s23] sm:$0xff]  ;;  %v426_v55 = vld [vmem:[%s1263_s23 + $0x18] sm:$0xff]  ;;  %v428_v58 = vld [vmem:[%s1263_s23 + $0x28] sm:$0xff]  ;;  %s410_s12 = scalar_lea.vmem %s1334_s4, %s1026_s9  ;;  %s418_s10 = scalar_lea.vmem %s1338_s8, %s1027_s25 }
  0x14   : > { %v535_v12 = vpack.c.bf16 %v424_v11, %v423_v10  ;;  %v420_v16 = vld [vmem:[%s389_s26] sm:$0xff]  ;;  %v536_v60 = vpack.c.bf16 %v426_v55, %v425_v54  ;;  %v429_v62 = vld [vmem:[%s1263_s23 + $0x30] sm:$0xff]  ;;  %v430_v63 = vld [vmem:[%s1263_s23 + $0x38] sm:$0xff] }
  0x15   : > { %v494_v5 = vmul.f32 1e+10, %v493_v4  ;;  %v467_v20 = vrot.slane %v420_v16, %v466_v15  ;;  %v489_v22 = vrot.slane %v420_v16, %v488_v17  ;;  %v478_v23 = vrot.slane %v420_v16, %v477_v18  ;;  %v427_v57 = vld [vmem:[%s1263_s23 + $0x20] sm:$0xff]  ;;  %v432_v1 = vld [vmem:[%s1263_s23 + $0x48] sm:$0xff]  ;;  %v433_v4 = vld [vmem:[%s1263_s23 + $0x50] sm:$0xff] }
  0x16   : > { %1141 = vset.pattern.permute.xlu0 %v1175_v6  ;;  %1143 = vset.pattern.permute.xlu1 %v1173_v0  ;;  %v537_v61 = vpack.c.bf16 %v428_v58, %v427_v57  ;;  %v435_v6 = vld [vmem:[%s1263_s23 + $0x60] sm:$0xff]  ;;  %v437_v10 = vld [vmem:[%s1263_s23 + $0x70] sm:$0xff]  ;;  %v438_v11 = vld [vmem:[%s1263_s23 + $0x78] sm:$0xff] }
  0x17   : > { %v496_v7 = vadd.f32 1000000.0, %v494_v5  ;;  %472 = vperm.xlu0 %1141, %v421_v2   ;;  %1059 = vmatprep.mubr.msk.bf16.mxu0 %vm511_vm0, %v535_v12  ;;  %v538_v2 = vpack.c.bf16 %v430_v63, %v429_v62  ;;  %v542_v12 = vpack.c.bf16 %v438_v11, %v437_v10  ;;  %v439_v13 = vld [vmem:[%s410_s12] sm:$0xff]  ;;  %v441_v16 = vld [vmem:[%s410_s12 + $0x10] sm:$0xff]  ;;  %v442_v17 = vld [vmem:[%s410_s12 + $0x18] sm:$0xff] }
  0x18   : > { %v677_v18 = vpack.c.bf16 %v442_v17, %v441_v16  ;;  %v1148_v54 = vld [vmem:[%s1335_s5 + $0x8] sm:$0xff]  }
  0x19   : > { %499 = vperm.xlu1 %1143, %v496_v7   ;;  %v436_v7 = vld [vmem:[%s1263_s23 + $0x68] sm:$0xff] }
  0x1b   : > { %1144 = vset.pattern.permute.xlu0 %v1173_v0  ;;  %v431_v0 = vld [vmem:[%s1263_s23 + $0x40] sm:$0xff] }
  0x1c   : > { %v539_v3 = vpack.c.bf16 %v432_v1, %v431_v0 }
  0x1d   : > { %504 = vperm.xlu1 %1143, %v494_v5   ;;  %v434_v5 = vld [vmem:[%s1263_s23 + $0x58] sm:$0xff] }
  0x21   : > { %814 = vperm.xlu1 %1143, %v456_v8   ;;  %v540_v8 = vpack.c.bf16 %v434_v5, %v433_v4 }
  0x25   : > { %819 = vperm.xlu1 %1143, %v457_v9   ;;  %v541_v9 = vpack.c.bf16 %v436_v7, %v435_v6 }
  0x91   : > { %v462_v19 = vpop.permute.xlu0 %461  ;;  %v484_v21 = vpop.permute.xlu1 %483 }
  0x92   : > { %v468_v24 = vsub.f32 %v462_v19, %v467_v20  ;;  %v490_v26 = vsub.f32 %v484_v21, %v489_v22  ;;  %v443_v19 = vld [vmem:[%s410_s12 + $0x20] sm:$0xff]  ;;  %v444_v20 = vld [vmem:[%s410_s12 + $0x28] sm:$0xff]  ;;  %v445_v22 = vld [vmem:[%s410_s12 + $0x30] sm:$0xff] }
  0x93   : > { %v678_v21 = vpack.c.bf16 %v444_v20, %v443_v19 }
  0x94   : > { %v469_v28 = vmul.f32 %v468_v24, %v468_v24  ;;  %v491_v31 = vmul.f32 %v490_v26, %v490_v26  ;;  %v1146_v26 = vld [vmem:[%s1336_s6 + $0x8] sm:$0xff]  }
  0x96   : > { %v473_v25 = vpop.permute.xlu0 %472 }
  0x97   : > { %v479_v27 = vsub.f32 %v473_v25, %v478_v23  ;;  %v446_v23 = vld [vmem:[%s410_s12 + $0x38] sm:$0xff]  ;;  %v1145_v25 = vld [vmem:[%s1336_s6] sm:$0xff]  }
  0x98   : > { %v500_v30 = vpop.permute.xlu1 %499  ;;  %v679_v24 = vpack.c.bf16 %v446_v23, %v445_v22 }
  0x99   : > { %v480_v29 = vmul.f32 %v479_v27, %v479_v27  ;;  %v1147_v27 = vld [vmem:[%s1335_s5] sm:$0xff]  }
  0x9a   : > { %1103 = vmatprep.mubr.bf16.mxu1 %v1147_v27 }
  0x9b   : > { %v481_v32 = vadd.f32 %v480_v29, %v469_v28  ;;  %v455_v28 = vld [vmem:[%s1337_s7] sm:$0xff]  ;;  %v458_v29 = vld [vmem:[%s1337_s7 + $0x18] sm:$0xff] }
  0x9c   : > { %v505_v34 = vpop.permute.xlu1 %504  ;;  %809 = vperm.xlu0 %1144, %v455_v28  }
  0x9d   : > { %v492_v33 = vadd.f32 %v491_v31, %v481_v32 }
  0x9f   : > { %vm495_vm1 = vcmp.gt.f32.partialorder %v492_v33, 0.64 }
  0xa0   : > { %v507_v35 = vsel %vm495_vm1, %v500_v30, %v505_v34  ;;  %824 = vperm.xlu0 %1144, %v458_v29  }
  0xa1   : > { %v508_v36 = vadd.f32 %v507_v35, %v492_v33 }
  0xa3   : > { %v512_v37 = vsel %vm511_vm0, %v508_v36, inf }
  0xa4   : > { %v513_v38 = vrot.slane %v512_v37, 4 }
  0xa6   : > { %v514_v39 = vmin.f32 %v512_v37, %v513_v38 }
  0xa8   : > { %v515_v40 = vrot.slane %v514_v39, 2 }
  0xaa   : > { %v516_v41 = vmin.f32 %v514_v39, %v515_v40 }
  0xac   : > { %v517_v42 = vrot.slane %v516_v41, 1 }
  0xae   : > { %v518_v43 = vmin.f32 %v516_v41, %v517_v42 }
  0xb0   : > { %vm519_vm2 = vcmp.le.f32.partialorder %v508_v36, %v518_v43 }
  0xb1   : > { %v520_v44 = vsel %vm519_vm2, %v465_v14, 8 }
  0xb2   : > { %v521_v45 = vsel %vm511_vm0, %v520_v44, 2147483647 }
  0xb3   : > { %v522_v46 = vrot.slane %v521_v45, 4 }
  0xb5   : > { %vm523_vm3 = vcmp.lt.s32.totalorder %v521_v45, %v522_v46 }
  0xb6   : > { %v524_v47 = vsel %vm523_vm3, %v521_v45, %v522_v46 }
  0xb7   : > { %v525_v48 = vrot.slane %v524_v47, 2 }
  0xb9   : > { %vm526_vm4 = vcmp.lt.s32.totalorder %v524_v47, %v525_v48 }
  0xba   : > { %v527_v49 = vsel %vm526_vm4, %v524_v47, %v525_v48 }
  0xbb   : > { %v528_v50 = vrot.slane %v527_v49, 1 }
  0xbd   : > { %vm529_vm5 = vcmp.lt.s32.totalorder %v527_v49, %v528_v50 }
  0xbe   : > { %v530_v51 = vsel %vm529_vm5, %v527_v49, %v528_v50 }
  0xbf   : > { %vm531_vm6 = vcmp.eq.s32.totalorder %v465_v14, %v530_v51  ;;  %v440_v14 = vld [vmem:[%s410_s12 + $0x8] sm:$0xff] }
  0xc0   : > { %v1004_v53 = vsel %vm531_vm6, 1.0, %v1176_v52  ;;  %v676_v15 = vpack.c.bf16 %v440_v14, %v439_v13 }
  0xc1   : > { %v534_v56 = vpack.c.bf16 %v1004_v53, %v1004_v53 }
  0xc3   : > { %1111 = vmatprep.subr.msk.bf16.mxu0 %vm567_vm7, %v534_v56  ;;  %v569_v59 = vsel %vm567_vm7, %v534_v56, 0 }
  0xc4   : > { %1058 = vmatpush3.bf16.msra.mxu0 %v569_v59  ;;  %v815_v59 = vpop.permute.xlu1 %814 }
  0xc5   : > { %1075 = vmatprep.subr.bf16.mxu0 %v676_v15 }
  0xc7   : > { %1060 = vmatmul.mubr.msk.bf16.vlgmr.msra.gmra.mrb[0].mxu0 %vm511_vm0, %v536_v60 }
  0xc8   : > { %1063 = vmatprep.mubr.msk.bf16.mxu0 %vm511_vm0, %v537_v61  ;;  %1076 = vmatpush3.bf16.msra.mxu0 %v676_v15  ;;  %v820_v0 = vpop.permute.xlu1 %819 }
  0xc9   : > { %1077 = vmatprep.subr.bf16.mxu0 %v677_v18 }
  0xcc   : > { %1078 = vmatpush3.bf16.msra.mxu0 %v677_v18 }
  0xcd   : > { %1079 = vmatprep.subr.bf16.mxu0 %v678_v21 }
  0xcf   : > { %1064 = vmatmul.mubr.msk.bf16.gmra.mrb[4].mxu0 %vm511_vm0, %v538_v2 }
  0xd0   : > { %1067 = vmatprep.mubr.msk.bf16.mxu0 %vm511_vm0, %v539_v3  ;;  %1080 = vmatpush3.bf16.msra.mxu0 %v678_v21 }
  0xd1   : > { %1081 = vmatprep.subr.bf16.mxu0 %v679_v24 }
  0xd4   : > { %1082 = vmatpush3.bf16.msra.mxu0 %v679_v24 }
  0xd7   : > { %1068 = vmatmul.mubr.msk.bf16.gmra.mrb[8].mxu0 %vm511_vm0, %v540_v8 }
  0xd8   : > { %1071 = vmatprep.mubr.msk.bf16.mxu0 %vm511_vm0, %v541_v9 }
  0xdf   : > { %1072 = vmatmul.mubr.msk.bf16.gmra.mrb[12].mxu0 %vm511_vm0, %v542_v12 }
  0xe0   : > { %1083 = vmatprep.mubr.msk.bf16.mxu0 %vm690_vm8, %v1145_v25 }
  0xe7   : > { %1084 = vmatmul.mubr.msk.bf16.vlgmr.msra.gmra.mrb[16].mxu0 %vm690_vm8, %v1146_v26 }
 0x11b   : > { %v810_v60 = vpop.permute.xlu0 %809 }
 0x11f   : > { %v825_v6 = vpop.permute.xlu0 %824 }
 0x19a   : > { %v1061_v30 = vpop.f32.mrb[0].mxu0 }
 0x19b   : > { %v605_v31 = vpop.f32.mrb[1].mxu0 }
 0x19c   : > { %v1062_v32 = vpop.f32.mrb[2].mxu0 }
 0x19d   : > { %v669_v33 = vpack.c.bf16 %v1062_v32, %v1061_v30  ;;  %v608_v34 = vpop.f32.mrb[3].mxu0 }
 0x19e   : > { %v668_v35 = vpack.c.bf16 %v608_v34, %v605_v31 }
 0x1a0   : > { %1087 = vmatprep.subr.bf16.mxu1 %v668_v35 }
 0x1a1   : > { %1088 = vmatpush3.bf16.msra.mxu1 %v668_v35 }
 0x1a2   : > { %v1065_v36 = vpop.f32.mrb[4].mxu0  ;;  %1089 = vmatprep.subr.bf16.mxu1 %v669_v33 }
 0x1a3   : > { %v621_v37 = vpop.f32.mrb[5].mxu0 }
 0x1a4   : > { %v1066_v38 = vpop.f32.mrb[6].mxu0 }
 0x1a5   : > { %v671_v39 = vpack.c.bf16 %v1066_v38, %v1065_v36  ;;  %v624_v40 = vpop.f32.mrb[7].mxu0  ;;  %1090 = vmatpush3.bf16.msra.mxu1 %v669_v33 }
 0x1a6   : > { %v670_v41 = vpack.c.bf16 %v624_v40, %v621_v37 }
 0x1a8   : > { %1091 = vmatprep.subr.bf16.mxu1 %v670_v41 }
 0x1a9   : > { %1092 = vmatpush3.bf16.msra.mxu1 %v670_v41 }
 0x1aa   : > { %v1069_v42 = vpop.f32.mrb[8].mxu0  ;;  %1093 = vmatprep.subr.bf16.mxu1 %v671_v39 }
 0x1ab   : > { %v637_v43 = vpop.f32.mrb[9].mxu0 }
 0x1ac   : > { %v1070_v44 = vpop.f32.mrb[10].mxu0 }
 0x1ad   : > { %v673_v45 = vpack.c.bf16 %v1070_v44, %v1069_v42  ;;  %v640_v46 = vpop.f32.mrb[11].mxu0  ;;  %1094 = vmatpush3.bf16.msra.mxu1 %v671_v39 }
 0x1ae   : > { %v672_v47 = vpack.c.bf16 %v640_v46, %v637_v43 }
 0x1b0   : > { %1095 = vmatprep.subr.bf16.mxu1 %v672_v47 }
 0x1b1   : > { %1096 = vmatpush3.bf16.msra.mxu1 %v672_v47 }
 0x1b2   : > { %v1073_v48 = vpop.f32.mrb[12].mxu0  ;;  %1097 = vmatprep.subr.bf16.mxu1 %v673_v45 }
 0x1b3   : > { %v653_v49 = vpop.f32.mrb[13].mxu0 }
 0x1b4   : > { %v1074_v50 = vpop.f32.mrb[14].mxu0 }
 0x1b5   : > { %v675_v51 = vpack.c.bf16 %v1074_v50, %v1073_v48  ;;  %v656_v52 = vpop.f32.mrb[15].mxu0  ;;  %1098 = vmatpush3.bf16.msra.mxu1 %v673_v45 }
 0x1b6   : > { %v674_v53 = vpack.c.bf16 %v656_v52, %v653_v49 }
 0x1b8   : > { %1099 = vmatprep.subr.bf16.mxu1 %v674_v53 }
 0x1b9   : > { %1100 = vmatpush3.bf16.msra.mxu1 %v674_v53 }
 0x1ba   : > { %1101 = vmatprep.subr.bf16.mxu1 %v675_v51  ;;  %v1085_v55 = vpop.f32.mrb[16].mxu0 }
 0x1bb   : > { %v731_v56 = vpop.f32.mrb[17].mxu0 }
 0x1bc   : > { %v1086_v57 = vpop.f32.mrb[18].mxu0 }
 0x1bd   : > { %1102 = vmatpush3.bf16.msra.mxu1 %v675_v51  ;;  %v734_v58 = vpop.f32.mrb[19].mxu0 }
 0x1c0   : > { %1104 = vmatmul.mubr.bf16.vlgmr.msra.gmra.mrb[0].mxu1 %v1148_v54 }
 0x293   : > { %v1105_v61 = vpop.f32.mrb[0].mxu1 }
 0x294   : > { %v801_v62 = vadd.f32 %v1105_v61, %v1085_v55  ;;  %v792_v63 = vpop.f32.mrb[1].mxu1 }
 0x295   : > { %v793_v1 = vadd.f32 %v792_v63, %v731_v56  ;;  %v1106_v2 = vpop.f32.mrb[2].mxu1 }
 0x296   : > { %v829_v3 = vadd.f32 %v820_v0, %v801_v62  ;;  %v804_v4 = vadd.f32 %v1106_v2, %v1086_v57  ;;  %v795_v5 = vpop.f32.mrb[3].mxu1 }
 0x297   : > { %v827_v7 = vadd.f32 %v810_v60, %v793_v1  ;;  %v796_v8 = vadd.f32 %v795_v5, %v734_v58 }
 0x298   : > { %v833_v9 = vmax.f32 %v829_v3, 0.0  ;;  %v830_v10 = vadd.f32 %v825_v6, %v804_v4 }
 0x299   : > { %v831_v11 = vmax.f32 %v827_v7, 0.0  ;;  %v828_v12 = vadd.f32 %v815_v59, %v796_v8 }
 0x29a   : > { %v1030_v13 = vpack.c.bf16 %v833_v9, %v833_v9  ;;  %v834_v14 = vmax.f32 %v830_v10, 0.0 }
 0x29b   : > { %v1028_v15 = vpack.c.bf16 %v831_v11, %v831_v11  ;;  %v832_v16 = vmax.f32 %v828_v12, 0.0 }
 0x29c   : > { %854 = vst.msk [vmem:[%s418_s10 + $0x8] sm:$0xf] %vm851_vm9, %v1030_v13  ;;  %v1031_v17 = vpack.c.bf16 %v834_v14, %v834_v14 }
 0x29d   : > { %852 = vst.msk [vmem:[%s418_s10] sm:$0xf] %vm851_vm9, %v1028_v15  ;;  %v1029_v18 = vpack.c.bf16 %v832_v16, %v832_v16 }
 0x29e   : > { %855 = vst.msk [vmem:[%s418_s10 + $0xc] sm:$0xf] %vm851_vm9, %v1031_v17 }
 0x29f   : > { %853 = vst.msk [vmem:[%s418_s10 + $0x4] sm:$0xf] %vm851_vm9, %v1029_v18 }
 0x2a0 PF: > { %s18_s29 = sadd.s32 1, %s1171_s29   ;;  %s1339_s27 = smov %s1167_s28 }
 0x2a1   : > { %p15_p5 = scmp.ge.s32.totalorder %s18_s29, 4   ;;  %s1340_s28 = smov %s1342_s30 }
 0x2a3   :  { %17 = sbr.rel (!%p15_p5) target bundleno = 2 (0x2), region = 94 }

</bundles_post_ra>
